<compile_context>
chip_gen: v7x
topology: tpu7x:2x2x1
jax: 0.10.0
libtpu: 0.0.40
codegen_flags: <defaults>
</compile_context>

<pallas_src>
from functools import partial

import jax
import jax.numpy as jnp
from jax.experimental import pallas as pl
from jax.experimental.pallas import tpu as pltpu

LANE = 128
EPS = 1e-5

_VMEM_CFG = None


def _vmem_config():
    """(vmem_limit_bytes, per-call tile budget) -- generation aware."""
    global _VMEM_CFG
    if _VMEM_CFG is None:
        phys = 64 * 1024 * 1024                      # conservative (v7x) default
        try:
            info = pltpu.get_tpu_info()
            for attr in ("vmem_capacity_bytes", "vmem_bytes", "vmem_size_bytes"):
                val = getattr(info, attr, None)
                if val:
                    phys = int(val)
                    break
        except Exception:
            pass
        if phys >= 128 * 1024 * 1024:                # v5e / v6e (128 MiB parts)
            _VMEM_CFG = (96 * 1024 * 1024, 40 * 1024 * 1024)
        else:                                        # v7x (64 MiB physical)
            _VMEM_CFG = (32 * 1024 * 1024, 12 * 1024 * 1024)
    return _VMEM_CFG


def _round_up(x, m):
    return (x + m - 1) // m * m


def _pad_vec(v, c_pad):
    return jnp.pad(v.astype(jnp.float32), (0, c_pad - v.shape[0]))


def _pad_rows(mat, k_pad):
    return jnp.pad(mat, ((0, k_pad - mat.shape[0]), (0, 0)))


def _pad_cols_to(mat, k_pad):
    return jnp.pad(mat, ((0, 0), (0, k_pad - mat.shape[1])))


# ---------------------------------------------------------------------------
# Pass-1 kernel: conv-as-matmul (bf16 MXU, f32 accumulate) writing bf16
# pre-BN activations + PER-TILE partial channel sums / sums-of-squares.
# No cross-iteration state -> grid axis can be "parallel" (2 TCs on v7x).
# Optionally runs a second (1x1 shortcut) matmul stream on the same M tile.
# ---------------------------------------------------------------------------
def _matmul_stats_kernel(*refs, dual: bool):
    if dual:
        (p_ref, w_ref, q_ref, v_ref,
         y_ref, ysum_ref, ysq_ref, z_ref, zsum_ref, zsq_ref) = refs
    else:
        p_ref, w_ref, y_ref, ysum_ref, ysq_ref = refs

    y = jnp.dot(p_ref[...], w_ref[...], preferred_element_type=jnp.float32)
    y_ref[...] = y.astype(y_ref.dtype)                       # bf16 store (halved)
    ysum_ref[...] = jnp.sum(y, axis=0, keepdims=True).reshape(1, 1, -1)
    ysq_ref[...] = jnp.sum(y * y, axis=0, keepdims=True).reshape(1, 1, -1)

    if dual:
        z = jnp.dot(q_ref[...], v_ref[...], preferred_element_type=jnp.float32)
        z_ref[...] = z.astype(z_ref.dtype)
        zsum_ref[...] = jnp.sum(z, axis=0, keepdims=True).reshape(1, 1, -1)
        zsq_ref[...] = jnp.sum(z * z, axis=0, keepdims=True).reshape(1, 1, -1)


def conv_matmul_stats(patches, w_mat, c_pad, xs=None, ws=None, max_tile_m=1024):
    """Tiled (patches @ W) producing bf16 pre-BN activations + per-tile stats."""
    m_real, k = patches.shape
    dual = xs is not None
    k_s = xs.shape[1] if dual else 0
    vmem_limit, tile_budget = _vmem_config()

    # Working-set model (bytes): resident weights (still double-buffered by the
    # pipeline) + per-row streamed tiles (patches in / bf16 y out), x2 buffers.
    weight_bytes = 2 * (k * c_pad * 2)
    per_row = 2 * (2 * k + 2 * c_pad)
    if dual:
        weight_bytes += 2 * (k_s * c_pad * 2)
        per_row += 2 * (2 * k_s + 2 * c_pad)
    avail = max(tile_budget - weight_bytes, 512 * 1024)

    tile_m = max_tile_m
    while tile_m > 256 and tile_m * per_row > avail:         # floor: 256 rows
        tile_m //= 2
    tile_m = max(8, min(tile_m, _round_up(m_real, 8)))
    m_pad = _round_up(m_real, tile_m)
    num_tiles = m_pad // tile_m

    def prep_rows(a):   # bf16 + zero-pad rows (padded rows contribute 0 to sums)
        a = a.astype(jnp.bfloat16)
        return jnp.pad(a, ((0, m_pad - a.shape[0]), (0, 0)))

    row_out_spec = pl.BlockSpec((tile_m, c_pad), lambda i: (i, 0))
    stat_spec = pl.BlockSpec((1, 1, c_pad), lambda i: (i, 0, 0))
    stat_shape = jax.ShapeDtypeStruct((num_tiles, 1, c_pad), jnp.float32)

    args = [prep_rows(patches), w_mat.astype(jnp.bfloat16)]
    in_specs = [
        pl.BlockSpec((tile_m, k), lambda i: (i, 0)),
        pl.BlockSpec((k, c_pad), lambda i: (0, 0)),          # weights stay resident
    ]
    out_shape = [jax.ShapeDtypeStruct((m_pad, c_pad), jnp.bfloat16),
                 stat_shape, stat_shape]
    out_specs = [row_out_spec, stat_spec, stat_spec]
    flops = 2 * m_pad * k * c_pad
    bytes_accessed = (m_pad * k * 2 + k * c_pad * 2 + m_pad * c_pad * 2
                      + 2 * num_tiles * c_pad * 4)

    if dual:
        args += [prep_rows(xs), ws.astype(jnp.bfloat16)]
        in_specs += [
            pl.BlockSpec((tile_m, k_s), lambda i: (i, 0)),
            pl.BlockSpec((k_s, c_pad), lambda i: (0, 0)),
        ]
        out_shape += [jax.ShapeDtypeStruct((m_pad, c_pad), jnp.bfloat16),
                      stat_shape, stat_shape]
        out_specs += [row_out_spec, stat_spec, stat_spec]
        flops += 2 * m_pad * k_s * c_pad
        bytes_accessed += (m_pad * k_s * 2 + k_s * c_pad * 2
                           + m_pad * c_pad * 2 + 2 * num_tiles * c_pad * 4)

    outs = pl.pallas_call(
        partial(_matmul_stats_kernel, dual=dual),
        out_shape=tuple(out_shape),
        grid=(num_tiles,),
        in_specs=in_specs,
        out_specs=tuple(out_specs),
        compiler_params=pltpu.CompilerParams(
            dimension_semantics=("parallel",),               # per-tile partial stats
            vmem_limit_bytes=vmem_limit),
        cost_estimate=pl.CostEstimate(flops=flops, transcendentals=0,
                                      bytes_accessed=bytes_accessed),
    )(*args)
    return outs + (tile_m,)


# ---------------------------------------------------------------------------
# Pass-2 kernel: normalize (precomputed scale/bias) + optional residual
# (identity or second BN-normalized shortcut stream) + ReLU.
# ---------------------------------------------------------------------------
def _bn_finalize_kernel(*refs, mode: str):
    if mode == "plain":
        y_ref, sc_ref, bi_ref, o_ref = refs
        out = y_ref[...].astype(jnp.float32) * sc_ref[...] + bi_ref[...]
    elif mode == "residual":
        y_ref, sc_ref, bi_ref, r_ref, o_ref = refs
        out = (y_ref[...].astype(jnp.float32) * sc_ref[...] + bi_ref[...]
               + r_ref[...].astype(jnp.float32))
    else:  # "bn_shortcut": fused 1x1-conv shortcut BN + add
        y_ref, sc_ref, bi_ref, z_ref, sc2_ref, bi2_ref, o_ref = refs
        out = (y_ref[...].astype(jnp.float32) * sc_ref[...] + bi_ref[...]
               + z_ref[...].astype(jnp.float32) * sc2_ref[...] + bi2_ref[...])
    o_ref[...] = jnp.maximum(out, 0.0).astype(o_ref.dtype)


def bn_finalize(y, scale, bias, tile_m, residual=None, shortcut=None,
                out_dtype=jnp.bfloat16):
    m_pad, c_pad = y.shape
    vmem_limit, _ = _vmem_config()
    row_spec = pl.BlockSpec((tile_m, c_pad), lambda i: (i, 0))
    vec_spec = pl.BlockSpec((1, c_pad), lambda i: (0, 0))

    itemsize = jnp.dtype(out_dtype).itemsize
    flops = 3 * m_pad * c_pad
    bytes_accessed = m_pad * c_pad * (2 + itemsize) + 4 * c_pad * 4

    if shortcut is not None:
        mode = "bn_shortcut"
        z, scale_s, bias_s = shortcut
        args = [y, scale, bias, z, scale_s, bias_s]
        in_specs = [row_spec, vec_spec, vec_spec, row_spec, vec_spec, vec_spec]
        flops += 3 * m_pad * c_pad
        bytes_accessed += m_pad * c_pad * 2 + 2 * c_pad * 4
    elif residual is not None:
        mode = "residual"
        # bf16 residual, channel + row zero-padded only (no f32 copy).
        r = jnp.pad(residual.astype(jnp.bfloat16),
                    ((0, m_pad - residual.shape[0]),
                     (0, c_pad - residual.shape[1])))
        args = [y, scale, bias, r]
        in_specs = [row_spec, vec_spec, vec_spec, row_spec]
        flops += m_pad * c_pad
        bytes_accessed += m_pad * c_pad * 2
    else:
        mode = "plain"
        args = [y, scale, bias]
        in_specs = [row_spec, vec_spec, vec_spec]

    return pl.pallas_call(
        partial(_bn_finalize_kernel, mode=mode),
        out_shape=jax.ShapeDtypeStruct((m_pad, c_pad), out_dtype),
        grid=(m_pad // tile_m,),
        in_specs=in_specs,
        out_specs=row_spec,
        compiler_params=pltpu.CompilerParams(
            dimension_semantics=("parallel",),               # shard over TCs
            vmem_limit_bytes=vmem_limit),
        cost_estimate=pl.CostEstimate(flops=flops, transcendentals=0,
                                      bytes_accessed=bytes_accessed),
    )(*args)


def bn_scale_bias(ysum_parts, ysq_parts, m_count, gamma_pad, beta_pad, eps=EPS):
    """Tiny per-channel glue: reduce per-tile partials, fold into scale/bias."""
    ysum = jnp.sum(ysum_parts, axis=0)                       # (1, C)
    ysq = jnp.sum(ysq_parts, axis=0)
    mean = ysum / m_count
    var = jnp.maximum(ysq / m_count - mean * mean, 0.0)      # biased batch variance
    inv = jax.lax.rsqrt(var + eps)
    scale = gamma_pad.reshape(1, -1) * inv
    bias = beta_pad.reshape(1, -1) - mean * scale
    return scale, bias


# ---------------------------------------------------------------------------
# JAX glue: im2col for 3x3 conv (padding=1) and weight reshaping (bf16 in).
# ---------------------------------------------------------------------------
def im2col3x3(x_nhwc, stride):
    n, h, w, c = x_nhwc.shape
    xp = jnp.pad(x_nhwc, ((0, 0), (1, 1), (1, 1), (0, 0)))
    h_out = (h + 2 - 3) // stride + 1
    w_out = (w + 2 - 3) // stride + 1
    cols = []
    for ky in range(3):
        for kx in range(3):
            cols.append(
                xp[:, ky:ky + stride * h_out:stride, kx:kx + stride * w_out:stride, :])
    patches = jnp.concatenate(cols, axis=-1)                 # (N, Ho, Wo, 9*C)
    return patches.reshape(n * h_out * w_out, 9 * c), (n, h_out, w_out)


def w3x3_to_mat(w, cin_pad, cout_pad):
    # PyTorch conv weight (Cout, Cin, 3, 3) -> (9*cin_pad, cout_pad),
    # tap-major (matching im2col), zero rows/cols for padded channels.
    c_out, c_in, _, _ = w.shape
    wt = jnp.transpose(w.astype(jnp.float32), (2, 3, 1, 0))  # (3, 3, Cin, Cout)
    wt = jnp.pad(wt, ((0, 0), (0, 0), (0, cin_pad - c_in), (0, cout_pad - c_out)))
    return wt.reshape(9 * cin_pad, cout_pad)


# ---------------------------------------------------------------------------
# BasicBlock forward
# ---------------------------------------------------------------------------
def basic_block_forward(x_nchw, params, stride, eps=EPS, max_tile_m=1024):
    # NCHW -> NHWC, cast to bf16 BEFORE im2col so the 9x-amplified patches
    # never exist in f32.
    x = jnp.transpose(x_nchw, (0, 2, 3, 1)).astype(jnp.bfloat16)
    n, h, w, c_in = x.shape
    planes = params["w1"].shape[0]
    c_pad = _round_up(planes, LANE)                          # lane-dense C

    # ---- conv1 -> bn1 -> relu --------------------------------------------
    p1, (_, h_o, w_o) = im2col3x3(x, stride)
    m1 = p1.shape[0]
    k1_pad = _round_up(p1.shape[1], LANE)                    # lane-dense K
    w1_mat = _pad_rows(w3x3_to_mat(params["w1"], c_in, c_pad), k1_pad)
    y1, s1, q1, tile1 = conv_matmul_stats(
        _pad_cols_to(p1, k1_pad), w1_mat, c_pad, max_tile_m=max_tile_m)
    sc1, bi1 = bn_scale_bias(s1, q1, m1, _pad_vec(params["g1"], c_pad),
                             _pad_vec(params["b1"], c_pad), eps)
    out1 = bn_finalize(y1, sc1, bi1, tile1, out_dtype=jnp.bfloat16)
    # Keep the channel-padded bf16 layout: conv2's weights carry zero rows for
    # the padded channels, so no slice -> re-pad round trip.
    out1_img = out1[:m1].reshape(n, h_o, w_o, c_pad)

    # ---- conv2 -> bn2 (+ shortcut) -> relu ---------------------------------
    p2, _ = im2col3x3(out1_img, 1)                           # K = 9*c_pad (aligned)
    m2 = p2.shape[0]
    w2_mat = w3x3_to_mat(params["w2"], c_pad, c_pad)
    g2 = _pad_vec(params["g2"], c_pad)
    b2 = _pad_vec(params["b2"], c_pad)

    if stride != 1 or c_in != planes:
        # Downsample path: 1x1 shortcut conv fused into the conv2 pass-1
        # pipeline; its BN + add + relu fuse into the final pass-2 kernel.
        xs = x[:, ::stride, ::stride, :].reshape(m2, c_in)
        ks_pad = _round_up(c_in, LANE)
        ws_mat = _pad_rows(
            _pad_cols_to(params["ws"].reshape(planes, c_in).T.astype(jnp.float32),
                         c_pad),
            ks_pad)
        y2, s2, q2, ys, ss, qs, tile2 = conv_matmul_stats(
            p2, w2_mat, c_pad, xs=_pad_cols_to(xs, ks_pad), ws=ws_mat,
            max_tile_m=max_tile_m)
        sc2, bi2 = bn_scale_bias(s2, q2, m2, g2, b2, eps)
        scs, bis = bn_scale_bias(ss, qs, m2, _pad_vec(params["gs"], c_pad),
                                 _pad_vec(params["bs"], c_pad), eps)
        out2 = bn_finalize(y2, sc2, bi2, tile2, shortcut=(ys, scs, bis),
                           out_dtype=jnp.float32)
    else:
        # Identity shortcut: x read directly (bf16) as the residual tile input.
        y2, s2, q2, tile2 = conv_matmul_stats(p2, w2_mat, c_pad,
                                              max_tile_m=max_tile_m)
        sc2, bi2 = bn_scale_bias(s2, q2, m2, g2, b2, eps)
        out2 = bn_finalize(y2, sc2, bi2, tile2, residual=x.reshape(m2, c_in),
                           out_dtype=jnp.float32)

    out = out2[:m2, :planes].reshape(n, h_o, w_o, planes)
    # TODO(synk): when chaining blocks, keep NHWC/bf16 and skip this transpose.
    return jnp.transpose(out, (0, 3, 1, 2))                  # NHWC -> NCHW


# ---------------------------------------------------------------------------
# Pure-JAX reference (training-mode BN, biased variance) for validation.
# ---------------------------------------------------------------------------
def basic_block_reference(x_nchw, params, stride, eps=EPS):
    x = x_nchw.astype(jnp.float32)
    planes = params["w1"].shape[0]

    def conv(a, w, s, pad):
        return jax.lax.conv_general_dilated(
            a, w, (s, s), ((pad, pad), (pad, pad)),
            dimension_numbers=("NCHW", "OIHW", "NCHW"))

    def bn(y, g, b):
        mean = jnp.mean(y, axis=(0, 2, 3), keepdims=True)
        var = jnp.mean((y - mean) ** 2, axis=(0, 2, 3), keepdims=True)
        return ((y - mean) * jax.lax.rsqrt(var + eps)
                * g.reshape(1, -1, 1, 1) + b.reshape(1, -1, 1, 1))

    out = jax.nn.relu(bn(conv(x, params["w1"], stride, 1), params["g1"], params["b1"]))
    out = bn(conv(out, params["w2"], 1, 1), params["g2"], params["b2"])
    if stride != 1 or x.shape[1] != planes:
        sc = bn(conv(x, params["ws"], stride, 0), params["gs"], params["bs"])
    else:
        sc = x
    return jax.nn.relu(out + sc)


# ---------------------------------------------------------------------------
# Deterministic parameter init (synthetic — shapes from BasicBlock.__init__)
# ---------------------------------------------------------------------------
def init_params(key, in_planes, planes, stride):
    ks = jax.random.split(key, 10)

    def kaiming(k, shape, fan_in):
        return jax.random.normal(k, shape, jnp.float32) * jnp.sqrt(2.0 / fan_in)

    params = {
        "w1": kaiming(ks[0], (planes, in_planes, 3, 3), in_planes * 9),
        "g1": 1.0 + 0.1 * jax.random.normal(ks[1], (planes,), jnp.float32),
        "b1": 0.1 * jax.random.normal(ks[2], (planes,), jnp.float32),
        "w2": kaiming(ks[3], (planes, planes, 3, 3), planes * 9),
        "g2": 1.0 + 0.1 * jax.random.normal(ks[4], (planes,), jnp.float32),
        "b2": 0.1 * jax.random.normal(ks[5], (planes,), jnp.float32),
    }
    if stride != 1 or in_planes != planes:
        params["ws"] = kaiming(ks[6], (planes, in_planes, 1, 1), in_planes)
        params["gs"] = 1.0 + 0.1 * jax.random.normal(ks[7], (planes,), jnp.float32)
        params["bs"] = 0.1 * jax.random.normal(ks[8], (planes,), jnp.float32)
    return params


if __name__ == "__main__":
    key = jax.random.PRNGKey(0)
    kx, kp1, kp2 = jax.random.split(key, 3)

    # Case 1: downsampling block (stride=2, channel change) -> fused conv shortcut.
    n, c_in, planes, hw, stride = 2, 4, 8, 16, 2
    x = jax.random.normal(kx, (n, c_in, hw, hw), jnp.float32)     # NCHW input
    params = init_params(kp1, c_in, planes, stride)
    y = jax.block_until_ready(basic_block_forward(x, params, stride))
    y_ref = basic_block_reference(x, params, stride)
    assert y.shape == (n, planes, hw // stride, hw // stride)
    assert bool(jnp.isfinite(y).all()) and bool(jnp.all(y >= 0.0))
    assert float(jnp.max(jnp.abs(y - y_ref))) < 0.5               # bf16 tolerance

    # Case 2: identity-shortcut block (stride=1, same channels); a small
    # max_tile_m forces a multi-tile grid to exercise the per-tile partial
    # BN-stats path.
    params_id = init_params(kp2, planes, planes, 1)
    x2 = jax.random.normal(kx, (n, planes, hw, hw), jnp.float32)
    y2 = jax.block_until_ready(basic_block_forward(x2, params_id, 1, max_tile_m=128))
    y2_ref = basic_block_reference(x2, params_id, 1)
    assert y2.shape == (n, planes, hw, hw)
    assert bool(jnp.isfinite(y2).all()) and bool(jnp.all(y2 >= 0.0))
    assert float(jnp.max(jnp.abs(y2 - y2_ref))) < 0.5

    print("KERNEL_OK")
</pallas_src>

<mosaic_0001>
module attributes {stable_mosaic.version = 11 : i64} {
  func.func @_matmul_stats_kernel(%arg0: i32, %arg1: memref<128x128xbf16, #tpu.memory_space<vmem>>, %arg2: memref<128x128xbf16, #tpu.memory_space<vmem>>, %arg3: memref<128x128xbf16, #tpu.memory_space<vmem>>, %arg4: memref<1x1x128xf32, #tpu.memory_space<vmem>>, %arg5: memref<1x1x128xf32, #tpu.memory_space<vmem>>) attributes {dimension_semantics = [#tpu.dimension_semantics<parallel>], iteration_bounds = array<i64: 1>, scalar_prefetch = 0 : i64, scratch_operands = 0 : i64, tpu.core_type = #tpu.core_type<tc>, window_params = [{transform_indices = @transform_0, window_bounds = array<i64: 128, 128>}, {pipeline_mode = #tpu.pipeline_mode<synchronous>, transform_indices = @transform_1, window_bounds = array<i64: 128, 128>}, {transform_indices = @transform_2, window_bounds = array<i64: 128, 128>}, {transform_indices = @transform_3, window_bounds = array<i64: 1, 1, 128>}, {transform_indices = @transform_4, window_bounds = array<i64: 1, 1, 128>}]} {
    %c0 = arith.constant 0 : index
    %c0_0 = arith.constant 0 : index
    %0 = vector.load %arg1[%c0, %c0_0] : memref<128x128xbf16, #tpu.memory_space<vmem>>, vector<128x128xbf16>
    %c0_1 = arith.constant 0 : index
    %c0_2 = arith.constant 0 : index
    %1 = vector.load %arg2[%c0_1, %c0_2] : memref<128x128xbf16, #tpu.memory_space<vmem>>, vector<128x128xbf16>
    %cst = arith.constant dense<0.000000e+00> : vector<128x128xf32>
    %2 = tpu.matmul %0, %1, %cst {dimension_numbers = #tpu.dot_dimension_numbers<[1], [0], [0], [1], [0, 0, 1, 1], [], []>} : vector<128x128xbf16>, vector<128x128xbf16>, vector<128x128xf32> -> vector<128x128xf32>
    %3 = arith.truncf %2 : vector<128x128xf32> to vector<128x128xbf16>
    %c0_3 = arith.constant 0 : index
    %c0_4 = arith.constant 0 : index
    %4 = vector.load %arg3[%c0_3, %c0_4] : memref<128x128xbf16, #tpu.memory_space<vmem>>, vector<128x128xbf16>
    tpu.vector_store %arg3[%c0_3, %c0_4], %3 {strides = array<i32>} : memref<128x128xbf16, #tpu.memory_space<vmem>>, vector<128x128xbf16>,
    %cst_5 = arith.constant dense<0.000000e+00> : vector<128xf32>
    %5 = vector.multi_reduction <add>, %2, %cst_5 [0] : vector<128x128xf32> to vector<128xf32>
    %6 = vector.shape_cast %5 : vector<128xf32> to vector<1x128xf32>
    %7 = vector.shape_cast %6 : vector<1x128xf32> to vector<1x1x128xf32>
    %c0_6 = arith.constant 0 : index
    %c0_7 = arith.constant 0 : index
    %c0_8 = arith.constant 0 : index
    %8 = vector.load %arg4[%c0_6, %c0_7, %c0_8] : memref<1x1x128xf32, #tpu.memory_space<vmem>>, vector<1x1x128xf32>
    tpu.vector_store %arg4[%c0_6, %c0_7, %c0_8], %7 {strides = array<i32>} : memref<1x1x128xf32, #tpu.memory_space<vmem>>, vector<1x1x128xf32>,
    %9 = arith.mulf %2, %2 : vector<128x128xf32>
    %cst_9 = arith.constant dense<0.000000e+00> : vector<128xf32>
    %10 = vector.multi_reduction <add>, %9, %cst_9 [0] : vector<128x128xf32> to vector<128xf32>
    %11 = vector.shape_cast %10 : vector<128xf32> to vector<1x128xf32>
    %12 = vector.shape_cast %11 : vector<1x128xf32> to vector<1x1x128xf32>
    %c0_10 = arith.constant 0 : index
    %c0_11 = arith.constant 0 : index
    %c0_12 = arith.constant 0 : index
    %13 = vector.load %arg5[%c0_10, %c0_11, %c0_12] : memref<1x1x128xf32, #tpu.memory_space<vmem>>, vector<1x1x128xf32>
    tpu.vector_store %arg5[%c0_10, %c0_11, %c0_12], %12 {strides = array<i32>} : memref<1x1x128xf32, #tpu.memory_space<vmem>>, vector<1x1x128xf32>,
    return
  }
  func.func @transform_0(%arg0: i32) -> (i32, i32) {
    %c0_i32 = arith.constant 0 : i32
    %c0_i32_0 = arith.constant 0 : i32
    return %arg0, %c0_i32 : i32, i32
  }
  func.func @transform_1(%arg0: i32) -> (i32, i32) {
    %c0_i32 = arith.constant 0 : i32
    %c0_i32_0 = arith.constant 0 : i32
    %c0_i32_1 = arith.constant 0 : i32
    return %c0_i32, %c0_i32_0 : i32, i32
  }
  func.func @transform_2(%arg0: i32) -> (i32, i32) {
    %c0_i32 = arith.constant 0 : i32
    %c0_i32_0 = arith.constant 0 : i32
    return %arg0, %c0_i32 : i32, i32
  }
  func.func @transform_3(%arg0: i32) -> (i32, i32, i32) {
    %c0_i32 = arith.constant 0 : i32
    %c0_i32_0 = arith.constant 0 : i32
    %c0_i32_1 = arith.constant 0 : i32
    return %arg0, %c0_i32, %c0_i32_0 : i32, i32, i32
  }
  func.func @transform_4(%arg0: i32) -> (i32, i32, i32) {
    %c0_i32 = arith.constant 0 : i32
    %c0_i32_0 = arith.constant 0 : i32
    %c0_i32_1 = arith.constant 0 : i32
    return %arg0, %c0_i32, %c0_i32_0 : i32, i32, i32
  }
}

</mosaic_0001>

<bundles_post_ra>
// kernel: tpu_custom_call.1
= control target key start
LH: loop header
LB: loop body
LE: loop exit
PB: predicated region body
PF: predicated region fallthrough
CT: control target
= control target key end

     0   :  { %10 = vsyncpa [#allocation3], 0  ;;  %s888_s0 = inlined_call_operand.hbm [shape: bf16[128,128], index: 0, kind: input, shape index: {}]   ;;  %s889_s1 = inlined_call_operand.hbm [shape: bf16[128,128], index: 1, kind: input, shape index: {}]   ;;  %s890_s2 = inlined_call_operand.hbm [shape: bf16[128,128], index: 2, kind: output, shape index: {0}]   ;;  %s891_s3 = inlined_call_operand.hbm [shape: f32[1,1,128], index: 3, kind: output, shape index: {1}]   ;;  %s892_s4 = inlined_call_operand.hbm [shape: f32[1,1,128], index: 4, kind: output, shape index: {2}]  }
   0x1   :  { %11 = vsyncpa [#allocation6], 0 }
   0x2   :  { %12 = vsyncpa [#allocation4], 0 }
   0x3   :  { %13 = vsyncpa [#allocation9], 0  ;;  %s755_s15 = smov [#allocation2]   ;;  %s637_s19 = scalar_lea.hbm %s888_s0, 1024 }
   0x4   :  { %s19_s16 = sshll.u32 %s755_s15, 4  ;;  %p638_p0 = scmp.ne.s32.totalorder %s888_s0, %s637_s19  ;;  %s20_s16 = int_to_ptr.vmem [resolvable:$true] %s19_s16 }
   0x5   :  { %p641_p1 = scmp.lt.u32.totalorder %s637_s19, %s888_s0 }
   0x7   :  { %p643_p2 = pnand %p641_p1, %p638_p0 }
   0x9   :  { %646 = shalt.err (!%p643_p2)
}
   0xa   :  { %s647_s24 = scalar_lea.vmem %s20_s16, 1024  ;;  %p652_p4 = scmp.lt.s32.totalorder %s20_s16, %s20_s16 }
   0xb   :  { %p648_p3 = scmp.ne.s32.totalorder %s20_s16, %s647_s24  ;;  %p653_p5 = scmp.lt.s32.totalorder %s647_s24, %s647_s24 }
   0xd   :  { %p654_p6 = por %p653_p5, %p652_p4 }
   0xf   :  { %p655_p7 = pnand %p654_p6, %p648_p3 }
  0x11   :  { %658 = shalt.err (!%p655_p7)
}
  0x12   :  { %s756_s25 = smov 64   ;;  %s757_s26 = smov 4  }
  0x13   :  { %25 = dma.hbm_to_vmem [thread:$0]  %s888_s0, 1024, %s20_s16, [#allocation3], %s756_s25, %s756_s25, %s757_s26  }
  0x14   :  { %s758_s29 = smov [#allocation5]   ;;  %s659_s7 = scalar_lea.hbm %s889_s1, 1024 }
  0x15   :  { %s31_s30 = sshll.u32 %s758_s29, 4  ;;  %p660_p8 = scmp.ne.s32.totalorder %s889_s1, %s659_s7  ;;  %s32_s30 = int_to_ptr.vmem [resolvable:$true] %s31_s30 }
  0x16   :  { %p663_p9 = scmp.lt.u32.totalorder %s659_s7, %s889_s1 }
  0x18   :  { %p665_p10 = pnand %p663_p9, %p660_p8 }
  0x1a   :  { %668 = shalt.err (!%p665_p10)
}
  0x1b   :  { %s669_s12 = scalar_lea.vmem %s32_s30, 1024  ;;  %p674_p12 = scmp.lt.s32.totalorder %s32_s30, %s32_s30 }
  0x1c   :  { %p670_p11 = scmp.ne.s32.totalorder %s32_s30, %s669_s12  ;;  %p675_p13 = scmp.lt.s32.totalorder %s669_s12, %s669_s12 }
  0x1e   :  { %p676_p0 = por %p675_p13, %p674_p12 }
  0x20   :  { %p677_p1 = pnand %p676_p0, %p670_p11 }
  0x22   :  { %680 = shalt.err (!%p677_p1)
}
  0x23   :  { %37 = dma.hbm_to_vmem [thread:$0]  %s889_s1, 1024, %s32_s30, [#allocation6], %s756_s25, %s756_s25, %s757_s26  }
  0x24   :  { %747 = dma.done.wait [#allocation3], 1024  }
  0x25   :  { %748 = vsyncadd [#allocation3], 4294966272 }
  0x26   :  { %749 = dma.done.wait [#allocation6], 1024  }
  0x27   :  { %750 = vsyncadd [#allocation6], 4294966272  ;;  %v621_v0 = vld [vmem:[#allocation5] sm:$0xff]   ;;  %v622_v1 = vld [vmem:[#allocation5 + $0x8] sm:$0xff]   ;;  %s759_s1 = smov [#allocation7]  }
  0x28   :  { %566 = vmatprep.subr.bf16.mxu0 %v621_v0  ;;  %598 = vmatprep.subr.bf16.mxu1 %v621_v0  ;;  %v623_v2 = vld [vmem:[#allocation5 + $0x10] sm:$0xff]   ;;  %v624_v3 = vld [vmem:[#allocation5 + $0x18] sm:$0xff]   ;;  %v629_v4 = vld [vmem:[#allocation2] sm:$0xff]   ;;  %s415_s14 = sshll.u32 %s759_s1, 4  ;;  %s416_s14 = int_to_ptr.vmem [resolvable:$true] %s415_s14 }
  0x29   :  { %567 = vmatpush3.bf16.msra.mxu0 %v621_v0  ;;  %606 = vmatpush3.bf16.msra.mxu1 %v621_v0  ;;  %v625_v5 = vld [vmem:[#allocation5 + $0x20] sm:$0xff]   ;;  %v626_v7 = vld [vmem:[#allocation5 + $0x28] sm:$0xff]   ;;  %v627_v8 = vld [vmem:[#allocation5 + $0x30] sm:$0xff]   ;;  %s681_s15 = scalar_lea.vmem %s416_s14, 1024  ;;  %p686_p3 = scmp.lt.s32.totalorder %s416_s14, %s416_s14 }
  0x2a   :  { %568 = vmatprep.subr.bf16.mxu0 %v622_v1  ;;  %599 = vmatprep.subr.bf16.mxu1 %v622_v1  ;;  %v633_v6 = vld [vmem:[#allocation2 + $0x20] sm:$0xff]   ;;  %v628_v9 = vld [vmem:[#allocation5 + $0x38] sm:$0xff]   ;;  %v630_v10 = vld [vmem:[#allocation2 + $0x8] sm:$0xff]   ;;  %p682_p2 = scmp.ne.s32.totalorder %s416_s14, %s681_s15  ;;  %p687_p4 = scmp.lt.s32.totalorder %s681_s15, %s681_s15 }
  0x2b   :  { %582 = vmatprep.mubr.bf16.mxu0 %v629_v4  ;;  %590 = vmatprep.mubr.bf16.mxu1 %v633_v6  ;;  %v634_v11 = vld [vmem:[#allocation2 + $0x28] sm:$0xff]   ;;  %v631_v12 = vld [vmem:[#allocation2 + $0x10] sm:$0xff]   ;;  %v632_v14 = vld [vmem:[#allocation2 + $0x18] sm:$0xff]  }
  0x2c   :  { %v635_v13 = vld [vmem:[#allocation2 + $0x30] sm:$0xff]   ;;  %v636_v15 = vld [vmem:[#allocation2 + $0x38] sm:$0xff]   ;;  %p688_p5 = por %p687_p4, %p686_p3 }
  0x2d   :  { %569 = vmatpush3.bf16.msra.mxu0 %v622_v1  ;;  %607 = vmatpush3.bf16.msra.mxu1 %v622_v1 }
  0x2e   :  { %570 = vmatprep.subr.bf16.mxu0 %v623_v2  ;;  %600 = vmatprep.subr.bf16.mxu1 %v623_v2  ;;  %p689_p6 = pnand %p688_p5, %p682_p2 }
  0x31   :  { %571 = vmatpush3.bf16.msra.mxu0 %v623_v2  ;;  %608 = vmatpush3.bf16.msra.mxu1 %v623_v2 }
  0x32   :  { %572 = vmatprep.subr.bf16.mxu0 %v624_v3  ;;  %601 = vmatprep.subr.bf16.mxu1 %v624_v3 }
  0x35   :  { %573 = vmatpush3.bf16.msra.mxu0 %v624_v3  ;;  %609 = vmatpush3.bf16.msra.mxu1 %v624_v3 }
  0x36   :  { %574 = vmatprep.subr.bf16.mxu0 %v625_v5  ;;  %602 = vmatprep.subr.bf16.mxu1 %v625_v5 }
  0x39   :  { %575 = vmatpush3.bf16.msra.mxu0 %v625_v5  ;;  %610 = vmatpush3.bf16.msra.mxu1 %v625_v5 }
  0x3a   :  { %576 = vmatprep.subr.bf16.mxu0 %v626_v7  ;;  %603 = vmatprep.subr.bf16.mxu1 %v626_v7 }
  0x3d   :  { %577 = vmatpush3.bf16.msra.mxu0 %v626_v7  ;;  %611 = vmatpush3.bf16.msra.mxu1 %v626_v7 }
  0x3e   :  { %578 = vmatprep.subr.bf16.mxu0 %v627_v8  ;;  %604 = vmatprep.subr.bf16.mxu1 %v627_v8 }
  0x41   :  { %579 = vmatpush3.bf16.msra.mxu0 %v627_v8  ;;  %612 = vmatpush3.bf16.msra.mxu1 %v627_v8 }
  0x42   :  { %580 = vmatprep.subr.bf16.mxu0 %v628_v9  ;;  %605 = vmatprep.subr.bf16.mxu1 %v628_v9 }
  0x45   :  { %581 = vmatpush3.bf16.msra.mxu0 %v628_v9  ;;  %613 = vmatpush3.bf16.msra.mxu1 %v628_v9 }
  0x48   :  { %583 = vmatmul.mubr.bf16.vlgmr.msra.gmra.mrb[0].mxu0 %v630_v10  ;;  %591 = vmatmul.mubr.bf16.vlgmr.msra.gmra.mrb[0].mxu1 %v634_v11 }
  0x49   :  { %586 = vmatprep.mubr.bf16.mxu0 %v631_v12  ;;  %594 = vmatprep.mubr.bf16.mxu1 %v635_v13 }
  0x50   :  { %587 = vmatmul.mubr.bf16.gmra.mrb[4].mxu0 %v632_v14  ;;  %595 = vmatmul.mubr.bf16.gmra.mrb[4].mxu1 %v636_v15 }
 0x11b   :  { %v584_v16 = vpop.f32.mrb[0].mxu0  ;;  %v817_v17 = vpop.f32.mrb[0].mxu1 }
 0x11c   :  { %v207_v18 = vpop.f32.mrb[1].mxu0  ;;  %v819_v19 = vpop.f32.mrb[1].mxu1  ;;  %v374_v31 = vmul.f32 %v584_v16, %v584_v16 }
 0x11d   :  { %v585_v20 = vpop.f32.mrb[2].mxu0  ;;  %v821_v21 = vpop.f32.mrb[2].mxu1  ;;  %v372_v22 = vmul.f32 %v207_v18, %v207_v18  ;;  %v380_v61 = vmul.f32 %v819_v19, %v819_v19 }
 0x11e   :  { %v511_v23 = vpack.c.bf16 %v585_v20, %v584_v16  ;;  %v210_v24 = vpop.f32.mrb[3].mxu0  ;;  %v531_v25 = vpack.c.bf16 %v821_v21, %v817_v17  ;;  %v825_v26 = vpop.f32.mrb[3].mxu1  ;;  %v375_v34 = vmul.f32 %v585_v20, %v585_v20 }
 0x11f   :  { %v506_v27 = vpack.c.bf16 %v210_v24, %v207_v18  ;;  %v350_v28 = vadd.f32 %v210_v24, %v207_v18  ;;  %v373_v29 = vmul.f32 %v210_v24, %v210_v24  ;;  %v526_v30 = vpack.c.bf16 %v825_v26, %v819_v19 }
 0x120   :  { %543 = vst [vmem:[#allocation7 + $0x8] sm:$0xff] %v511_v23   ;;  %547 = vst [vmem:[#allocation7 + $0x28] sm:$0xff] %v531_v25  }
 0x121   :  { %507 = vst [vmem:[#allocation7] sm:$0xff] %v506_v27   ;;  %v351_v32 = vadd.f32 %v584_v16, %v350_v28  ;;  %v388_v33 = vadd.f32 %v373_v29, %v372_v22  ;;  %546 = vst [vmem:[#allocation7 + $0x20] sm:$0xff] %v526_v30  }
 0x123   :  { %v389_v35 = vadd.f32 %v388_v33, %v374_v31  ;;  %v588_v36 = vpop.f32.mrb[4].mxu0  ;;  %v352_v37 = vadd.f32 %v585_v20, %v351_v32  ;;  %v596_v38 = vpop.f32.mrb[4].mxu1 }
 0x124   :  { %v223_v39 = vpop.f32.mrb[5].mxu0  ;;  %v255_v40 = vpop.f32.mrb[5].mxu1  ;;  %v378_v55 = vmul.f32 %v588_v36, %v588_v36 }
 0x125   :  { %v353_v41 = vadd.f32 %v352_v37, %v223_v39  ;;  %v376_v42 = vmul.f32 %v223_v39, %v223_v39  ;;  %v390_v43 = vadd.f32 %v389_v35, %v375_v34  ;;  %v589_v44 = vpop.f32.mrb[6].mxu0  ;;  %v597_v45 = vpop.f32.mrb[6].mxu1 }
 0x126   :  { %v521_v46 = vpack.c.bf16 %v589_v44, %v588_v36  ;;  %v226_v47 = vpop.f32.mrb[7].mxu0  ;;  %v541_v48 = vpack.c.bf16 %v597_v45, %v596_v38  ;;  %v258_v49 = vpop.f32.mrb[7].mxu1  ;;  %v379_v58 = vmul.f32 %v589_v44, %v589_v44 }
 0x127   :  { %v391_v50 = vadd.f32 %v390_v43, %v376_v42  ;;  %v516_v51 = vpack.c.bf16 %v226_v47, %v223_v39  ;;  %v354_v52 = vadd.f32 %v353_v41, %v226_v47  ;;  %v377_v53 = vmul.f32 %v226_v47, %v226_v47 }
 0x128   :  { %545 = vst [vmem:[#allocation7 + $0x18] sm:$0xff] %v521_v46   ;;  %549 = vst [vmem:[#allocation7 + $0x38] sm:$0xff] %v541_v48   ;;  %v536_v54 = vpack.c.bf16 %v258_v49, %v255_v40 }
 0x129   :  { %544 = vst [vmem:[#allocation7 + $0x10] sm:$0xff] %v516_v51   ;;  %v355_v56 = vadd.f32 %v588_v36, %v354_v52  ;;  %v392_v57 = vadd.f32 %v391_v50, %v377_v53 }
 0x12a   :  { %548 = vst [vmem:[#allocation7 + $0x30] sm:$0xff] %v536_v54  }
 0x12b   :  { %v393_v59 = vadd.f32 %v392_v57, %v378_v55  ;;  %v356_v60 = vadd.f32 %v589_v44, %v355_v56 }
 0x12c   :  { %692 = shalt.err (!%p689_p6)
}
 0x12d   :  { %s693_s18 = scalar_lea.hbm %s890_s2, 1024 }
 0x12e   :  { %p694_p7 = scmp.ne.s32.totalorder %s890_s2, %s693_s18  ;;  %p697_p8 = scmp.lt.u32.totalorder %s693_s18, %s890_s2 }
 0x130   :  { %p699_p9 = pnand %p697_p8, %p694_p7 }
 0x132   :  { %702 = shalt.err (!%p699_p9)
}
 0x133   :  { %421 = dma.vmem_to_hbm [thread:$0]  %s416_s14, 1024, %s890_s2, [#allocation4], %s756_s25, %s756_s25, %s757_s26   ;;  %v357_v62 = vadd.f32 %v356_v60, %v819_v19  ;;  %v394_v63 = vadd.f32 %v393_v59, %v379_v58  ;;  %v381_v2 = vmul.f32 %v825_v26, %v825_v26  ;;  %v382_v3 = vmul.f32 %v817_v17, %v817_v17 }
 0x134   :  { %v383_v6 = vmul.f32 %v821_v21, %v821_v21  ;;  %v384_v9 = vmul.f32 %v255_v40, %v255_v40  ;;  %v385_v14 = vmul.f32 %v258_v49, %v258_v49  ;;  %v386_v15 = vmul.f32 %v596_v38, %v596_v38  ;;  %s760_s2 = smov [#allocation8]   ;;  %s761_s26 = smov [#allocation10]  }
 0x135   :  { %v395_v0 = vadd.f32 %v394_v63, %v380_v61  ;;  %v358_v1 = vadd.f32 %v357_v62, %v825_v26  ;;  %v387_v19 = vmul.f32 %v597_v45, %v597_v45  ;;  %s428_s25 = sshll.u32 %s760_s2, 4  ;;  %s438_s27 = sshll.u32 %s761_s26, 4  ;;  %s429_s25 = int_to_ptr.vmem [resolvable:$true] %s428_s25  ;;  %s856_s27 = int_to_ptr.vmem [resolvable:$true] %s438_s27 }
 0x136   :  { %s703_s28 = scalar_lea.vmem %s429_s25, 16  ;;  %s707_s29 = scalar_lea.vmem %s429_s25, 32 }
 0x137   :  { %v359_v4 = vadd.f32 %v817_v17, %v358_v1  ;;  %v396_v5 = vadd.f32 %v395_v0, %v381_v2  ;;  %p704_p10 = scmp.ne.s32.totalorder %s429_s25, %s703_s28  ;;  %p708_p11 = scmp.lt.s32.totalorder %s429_s25, %s429_s25 }
 0x138   :  { %p709_p12 = scmp.lt.s32.totalorder %s707_s29, %s703_s28 }
 0x139   :  { %v397_v7 = vadd.f32 %v396_v5, %v382_v3  ;;  %v360_v8 = vadd.f32 %v821_v21, %v359_v4 }
 0x13a   :  { %p710_p13 = por %p709_p12, %p708_p11 }
 0x13b   :  { %v361_v10 = vadd.f32 %v360_v8, %v255_v40  ;;  %v398_v11 = vadd.f32 %v397_v7, %v383_v6 }
 0x13c   :  { %p711_p0 = pnand %p710_p13, %p704_p10 }
 0x13d   :  { %v399_v12 = vadd.f32 %v398_v11, %v384_v9  ;;  %v362_v13 = vadd.f32 %v361_v10, %v258_v49 }
 0x13f   :  { %v363_v16 = vadd.f32 %v596_v38, %v362_v13  ;;  %v400_v18 = vadd.f32 %v399_v12, %v385_v14 }
 0x141   :  { %v364_v20 = vadd.f32 %v597_v45, %v363_v16  ;;  %v401_v22 = vadd.f32 %v400_v18, %v386_v15 }
 0x143   :  { %v365_v17 = vrot.slane %v364_v20, 4  ;;  %v402_v23 = vadd.f32 %v401_v22, %v387_v19 }
 0x145   :  { %v403_v24 = vrot.slane %v402_v23, 4  ;;  %v366_v25 = vadd.f32 %v365_v17, %v364_v20 }
 0x147   :  { %v367_v26 = vrot.slane %v366_v25, 2  ;;  %v404_v27 = vadd.f32 %v403_v24, %v402_v23 }
 0x149   :  { %v368_v28 = vadd.f32 %v367_v26, %v366_v25  ;;  %v405_v21 = vrot.slane %v404_v27, 2 }
 0x14b   :  { %v369_v29 = vrot.slane %v368_v28, 1  ;;  %v406_v30 = vadd.f32 %v405_v21, %v404_v27 }
 0x14d   :  { %v370_v31 = vadd.f32 %v369_v29, %v368_v28  ;;  %v407_v32 = vrot.slane %v406_v30, 1 }
 0x14f   :  { %371 = vst [vmem:[#allocation8] sm:$0x1] %v370_v31  ;;  %v408_v33 = vadd.f32 %v407_v32, %v406_v30 }
 0x150   :  { %714 = shalt.err (!%p711_p0)
}
 0x151   :  { %s715_s6 = scalar_lea.hbm %s891_s3, 16 }
 0x152   :  { %p716_p1 = scmp.ne.s32.totalorder %s891_s3, %s715_s6  ;;  %p719_p2 = scmp.lt.u32.totalorder %s715_s6, %s891_s3 }
 0x154   :  { %p721_p3 = pnand %p719_p2, %p716_p1 }
 0x156   :  { %724 = shalt.err (!%p721_p3)
}
 0x157   :  { %431 = dma.vmem_to_hbm [thread:$0]  %s429_s25, 16, %s891_s3, [#allocation9]   ;;  %409 = vst [vmem:[#allocation10] sm:$0x1] %v408_v33 }
 0x158   :  { %s725_s0 = scalar_lea.vmem %s856_s27, 16  ;;  %s729_s13 = scalar_lea.vmem %s856_s27, 32 }
 0x159   :  { %p726_p4 = scmp.ne.s32.totalorder %s856_s27, %s725_s0  ;;  %p730_p5 = scmp.lt.s32.totalorder %s856_s27, %s856_s27 }
 0x15a   :  { %p731_p6 = scmp.lt.s32.totalorder %s729_s13, %s725_s0 }
 0x15c   :  { %p732_p7 = por %p731_p6, %p730_p5 }
 0x15e   :  { %p733_p8 = pnand %p732_p7, %p726_p4 }
 0x160   :  { %736 = shalt.err (!%p733_p8)
}
 0x161   :  { %s737_s15 = scalar_lea.hbm %s892_s4, 16 }
 0x162   :  { %p738_p9 = scmp.ne.s32.totalorder %s892_s4, %s737_s15  ;;  %p741_p10 = scmp.lt.u32.totalorder %s737_s15, %s892_s4 }
 0x164   :  { %p743_p11 = pnand %p741_p10, %p738_p9 }
 0x166   :  { %746 = shalt.err (!%p743_p11)
}
 0x167   :  { %441 = dma.vmem_to_hbm [thread:$0]  %s856_s27, 16, %s892_s4, [#allocation9]  }
 0x168   :  { %751 = dma.done.wait [#allocation4], 1024  }
 0x169   :  { %752 = vsyncadd [#allocation4], 4294966272 }
 0x16a   :  { %753 = dma.done.wait [#allocation9], 32  }
 0x16b   :  { %754 = vsyncadd [#allocation9], 4294967264 }
 0x16c   :  { %451 = vsyncpa [#allocation3], 1 }
 0x16d   :  { %452 = vsyncpa [#allocation6], 1 }
 0x16e   :  { %453 = vsyncpa [#allocation4], 1 }
 0x16f   :  { %454 = vsyncpa [#allocation9], 1 }

</bundles_post_ra>
